<compile_context>
chip_gen: v6e
topology: v6e:2x2x1
jax: 0.10.0
libtpu: 0.0.40
codegen_flags: <defaults>
</compile_context>

<pallas_src>
import functools

import jax
import jax.numpy as jnp
from jax.experimental import pallas as pl
from jax.experimental.pallas import tpu as pltpu

_LANE = 128
_RESIDENT_BYTES = 4 << 20   # single-buffer cap for keeping X@W_neigh resident in VMEM


def _round_up(v, m):
    return (v + m - 1) // m * m


def _pad2(arr, rows, cols):
    return jnp.pad(arr, ((0, rows - arr.shape[0]), (0, cols - arr.shape[1])))


def _pick_tiles(n):
    """Return (padded_n, tm, tk) with tm | npad and tk | npad, TPU-aligned, sized to
    amortize per-step pipeline overhead on the mem-bound A stream."""
    if n <= 512:
        npad = _round_up(n, 8)
        return npad, npad, npad            # single full-extent tile (legal block shape)
    npad = _round_up(n, 512)
    tm = 512
    tk = 512
    for cand in (2048, 1536, 1024):        # largest K slab that still divides npad
        if npad % cand == 0:
            tk = cand
            break
    return npad, tm, tk


def _agg_kernel(a_ref, xwn_ref, self_ref, rdeg_ref, o_ref, acc_ref,
                *, apply_relu, tk, resident):
    """One SAGEConv aggregation. Grid = (row tiles i, K-reduction tiles k).

    acc += A_bin_tile @ (X @ W_neigh) slab      (MXU, f32 accumulation)
    epilogue: out = act(acc * (1/deg) + (X @ W_self + b))
    """
    k = pl.program_id(1)

    @pl.when(k == 0)
    def _init():
        acc_ref[...] = jnp.zeros_like(acc_ref)

    if resident:
        # X@W_neigh is fully VMEM-resident; slice the K slab in-place (no HBM re-fetch).
        off = pl.multiple_of(k * tk, tk)
        xwn = xwn_ref[pl.ds(off, tk), :]
    else:
        xwn = xwn_ref[...]
    acc_ref[...] += jnp.dot(a_ref[...], xwn, preferred_element_type=jnp.float32)

    @pl.when(k == pl.num_programs(1) - 1)
    def _epilogue():
        h = acc_ref[...] * rdeg_ref[...] + self_ref[...]
        if apply_relu:
            h = jnp.maximum(h, 0.0)
        o_ref[...] = h.astype(o_ref.dtype)


def _sage_aggregate(a_bin, xwn, selfproj, rdeg, *, tm, tk, apply_relu, out_dtype):
    npad = a_bin.shape[0]
    fout = xwn.shape[1]
    grid = (npad // tm, npad // tk)

    resident = npad * fout * xwn.dtype.itemsize <= _RESIDENT_BYTES
    if resident:
        xwn_spec = pl.BlockSpec((npad, fout), lambda i, k: (0, 0))   # fetched once
    else:
        xwn_spec = pl.BlockSpec((tk, fout), lambda i, k: (k, 0))     # streamed slabs

    kernel = functools.partial(_agg_kernel, apply_relu=apply_relu, tk=tk,
                               resident=resident)
    return pl.pallas_call(
        kernel,
        out_shape=jax.ShapeDtypeStruct((npad, fout), out_dtype),
        grid_spec=pltpu.PrefetchScalarGridSpec(
            num_scalar_prefetch=0,
            grid=grid,
            in_specs=[
                pl.BlockSpec((tm, tk), lambda i, k: (i, k)),      # binary A tile (bf16)
                xwn_spec,                                         # X @ W_neigh (bf16)
                pl.BlockSpec((tm, fout), lambda i, k: (i, 0)),    # X @ W_self + b (f32)
                pl.BlockSpec((tm, 1), lambda i, k: (i, 0)),       # 1/deg (f32)
            ],
            out_specs=pl.BlockSpec((tm, fout), lambda i, k: (i, 0)),
            scratch_shapes=[pltpu.VMEM((tm, fout), jnp.float32)],
        ),
        compiler_params=pltpu.CompilerParams(
            dimension_semantics=("parallel", "arbitrary"),
            vmem_limit_bytes=32 * 1024 * 1024),
    )(a_bin, xwn, selfproj, rdeg)


def sage_forward(adj, x, w1_self, w1_neigh, b1, w2_self, w2_neigh, b2):
    """Two-layer GraphSAGE (mean aggregation) on a dense binary adjacency.

    adj[i, j] = 1 iff there is an edge j -> i (so row i's mean is over in-neighbours).
    """
    n = adj.shape[0]
    hid = w1_self.shape[1]
    out_f = w2_self.shape[1]

    npad, tm, tk = _pick_tiles(n)
    hid_p = _round_up(hid, _LANE)
    out_p = _round_up(out_f, _LANE)
    bf16 = jnp.bfloat16

    adj32 = adj.astype(jnp.float32)
    deg = jnp.sum(adj32, axis=1, keepdims=True)                   # in-degree per node
    rdeg = _pad2(1.0 / jnp.maximum(deg, 1.0), npad, 1)            # exact f32 1/deg (epilogue scale)
    a_bin = _pad2(adj32, npad, npad).astype(bf16)                 # {0,1} exact in bf16

    x32 = x.astype(jnp.float32)
    # O(N*F) pre-projections stay in plain XLA; only the O(N^2) aggregation is a kernel.
    xwn1 = _pad2(x32 @ w1_neigh, npad, hid_p).astype(bf16)
    self1 = _pad2(x32 @ w1_self + b1, npad, hid_p)                # f32; padded rows stay 0
    h1 = _sage_aggregate(a_bin, xwn1, self1, rdeg,
                         tm=tm, tk=tk, apply_relu=True, out_dtype=bf16)

    h1_32 = h1.astype(jnp.float32)                                # (npad, hid_p); padding exactly 0
    xwn2 = (h1_32 @ _pad2(w2_neigh, hid_p, out_p)).astype(bf16)
    self2 = h1_32 @ _pad2(w2_self, hid_p, out_p) + _pad2(b2, 1, out_p)
    h2 = _sage_aggregate(a_bin, xwn2, self2, rdeg,
                         tm=tm, tk=tk, apply_relu=False, out_dtype=jnp.float32)
    # TODO(synk): for small graphs, a single fused pallas_call holding A resident in VMEM
    # (read A from HBM once instead of twice) would give up to ~2x on the mem-bound case.
    return h2[:n, :out_f]


def _init_linear(key, fan_in, fan_out):
    # Deterministic Xavier-ish init; stored as (in, out) == nn.Linear.weight.T
    scale = 1.0 / jnp.sqrt(jnp.float32(fan_in))
    return jax.random.uniform(key, (fan_in, fan_out), jnp.float32, -scale, scale)


if __name__ == "__main__":
    N, IN_FEATS, HID_FEATS, OUT_FEATS = 16, 8, 32, 16

    key = jax.random.PRNGKey(0)
    k_adj, k_x, k1s, k1n, k2s, k2n, kb1, kb2 = jax.random.split(key, 8)

    # Deterministic random graph: adj[i, j] = 1 if edge j -> i.
    adj = (jax.random.uniform(k_adj, (N, N)) < 0.3).astype(jnp.float32)
    x = jax.random.normal(k_x, (N, IN_FEATS), jnp.float32)

    # SAGEConv params (fc_self / fc_neigh have no bias in DGL; one bias per layer).
    w1_self = _init_linear(k1s, IN_FEATS, HID_FEATS)
    w1_neigh = _init_linear(k1n, IN_FEATS, HID_FEATS)
    b1 = jax.random.uniform(kb1, (1, HID_FEATS), jnp.float32, -0.1, 0.1)
    w2_self = _init_linear(k2s, HID_FEATS, OUT_FEATS)
    w2_neigh = _init_linear(k2n, HID_FEATS, OUT_FEATS)
    b2 = jax.random.uniform(kb2, (1, OUT_FEATS), jnp.float32, -0.1, 0.1)

    out = jax.jit(sage_forward)(adj, x, w1_self, w1_neigh, b1,
                                w2_self, w2_neigh, b2)
    out = jax.block_until_ready(out)

    # Pure-JAX f32 reference of the same math. The kernel feeds the MXU bf16 operands
    # (binary A exact, projections rounded) with f32 accumulation and exact f32 1/deg,
    # so a modest tolerance covers bf16 rounding while catching real bugs.
    deg = jnp.sum(adj, axis=1, keepdims=True)
    a_norm = adj / jnp.maximum(deg, 1.0)
    h1 = jnp.maximum(x @ w1_self + (a_norm @ x) @ w1_neigh + b1, 0.0)
    ref = h1 @ w2_self + (a_norm @ h1) @ w2_neigh + b2

    assert out.shape == (N, OUT_FEATS)
    err = float(jnp.max(jnp.abs(out - ref)))
    assert jnp.allclose(out, ref, atol=3e-2, rtol=3e-2), err

    print("KERNEL_OK")
</pallas_src>

<mosaic_0001>
module attributes {stable_mosaic.version = 11 : i64} {
  func.func @_agg_kernel(%arg0: i32, %arg1: i32, %arg2: memref<16x16xbf16, #tpu.memory_space<vmem>>, %arg3: memref<16x128xbf16, #tpu.memory_space<vmem>>, %arg4: memref<16x128xf32, #tpu.memory_space<vmem>>, %arg5: memref<16x1xf32, #tpu.memory_space<vmem>>, %arg6: memref<16x128xbf16, #tpu.memory_space<vmem>>, %arg7: memref<16x128xf32, #tpu.memory_space<vmem>>) attributes {dimension_semantics = [#tpu.dimension_semantics<parallel>, #tpu.dimension_semantics<arbitrary>], iteration_bounds = array<i64: 1, 1>, scalar_prefetch = 0 : i64, scratch_operands = 1 : i64, tpu.core_type = #tpu.core_type<tc>, window_params = [{transform_indices = @transform_0, window_bounds = array<i64: 16, 16>}, {pipeline_mode = #tpu.pipeline_mode<synchronous>, transform_indices = @transform_1, window_bounds = array<i64: 16, 128>}, {transform_indices = @transform_2, window_bounds = array<i64: 16, 128>}, {transform_indices = @transform_3, window_bounds = array<i64: 16, 1>}, {transform_indices = @transform_4, window_bounds = array<i64: 16, 128>}]} {
    %c0_i32 = arith.constant 0 : i32
    %0 = arith.cmpi eq, %arg1, %c0_i32 : i32
    %1 = arith.extui %0 : i1 to i32
    %c0_i32_0 = arith.constant 0 : i32
    %2 = arith.cmpi ne, %1, %c0_i32_0 : i32
    scf.if %2 {
      %cst_9 = arith.constant 0.000000e+00 : f32
      %15 = vector.broadcast %cst_9 : f32 to vector<16x128xf32>
      %c0_10 = arith.constant 0 : index
      %c0_11 = arith.constant 0 : index
      %16 = vector.load %arg7[%c0_10, %c0_11] : memref<16x128xf32, #tpu.memory_space<vmem>>, vector<16x128xf32>
      tpu.vector_store %arg7[%c0_10, %c0_11], %15 {strides = array<i32>} : memref<16x128xf32, #tpu.memory_space<vmem>>, vector<16x128xf32>,
    } else {
    }
    %c16_i32 = arith.constant 16 : i32
    %3 = arith.muli %arg1, %c16_i32 : i32
    %4 = tpu.assume_multiple %3, 16 : i32
    %5 = arith.index_cast %4 : i32 to index
    %c0 = arith.constant 0 : index
    %6 = vector.load %arg3[%5, %c0] : memref<16x128xbf16, #tpu.memory_space<vmem>>, vector<16x128xbf16>
    %c0_1 = arith.constant 0 : index
    %c0_2 = arith.constant 0 : index
    %7 = vector.load %arg7[%c0_1, %c0_2] : memref<16x128xf32, #tpu.memory_space<vmem>>, vector<16x128xf32>
    %c0_3 = arith.constant 0 : index
    %c0_4 = arith.constant 0 : index
    %8 = vector.load %arg2[%c0_3, %c0_4] : memref<16x16xbf16, #tpu.memory_space<vmem>>, vector<16x16xbf16>
    %cst = arith.constant dense<0.000000e+00> : vector<16x128xf32>
    %9 = tpu.matmul %8, %6, %cst {dimension_numbers = #tpu.dot_dimension_numbers<[1], [0], [0], [1], [0, 0, 1, 1], [], []>} : vector<16x16xbf16>, vector<16x128xbf16>, vector<16x128xf32> -> vector<16x128xf32>
    %10 = arith.addf %7, %9 : vector<16x128xf32>
    %c0_5 = arith.constant 0 : index
    %c0_6 = arith.constant 0 : index
    %11 = vector.load %arg7[%c0_5, %c0_6] : memref<16x128xf32, #tpu.memory_space<vmem>>, vector<16x128xf32>
    tpu.vector_store %arg7[%c0_5, %c0_6], %10 {strides = array<i32>} : memref<16x128xf32, #tpu.memory_space<vmem>>, vector<16x128xf32>,
    %c0_i32_7 = arith.constant 0 : i32
    %12 = arith.cmpi eq, %arg1, %c0_i32_7 : i32
    %13 = arith.extui %12 : i1 to i32
    %c0_i32_8 = arith.constant 0 : i32
    %14 = arith.cmpi ne, %13, %c0_i32_8 : i32
    scf.if %14 {
      %c0_9 = arith.constant 0 : index
      %c0_10 = arith.constant 0 : index
      %15 = vector.load %arg7[%c0_9, %c0_10] : memref<16x128xf32, #tpu.memory_space<vmem>>, vector<16x128xf32>
      %c0_11 = arith.constant 0 : index
      %c0_12 = arith.constant 0 : index
      %16 = vector.load %arg5[%c0_11, %c0_12] : memref<16x1xf32, #tpu.memory_space<vmem>>, vector<16x1xf32>
      %17 = vector.broadcast %16 : vector<16x1xf32> to vector<16x128xf32>
      %18 = arith.mulf %15, %17 : vector<16x128xf32>
      %c0_13 = arith.constant 0 : index
      %c0_14 = arith.constant 0 : index
      %19 = vector.load %arg4[%c0_13, %c0_14] : memref<16x128xf32, #tpu.memory_space<vmem>>, vector<16x128xf32>
      %20 = arith.addf %18, %19 : vector<16x128xf32>
      %cst_15 = arith.constant 0.000000e+00 : f32
      %21 = vector.broadcast %cst_15 : f32 to vector<16x128xf32>
      %22 = arith.maximumf %20, %21 : vector<16x128xf32>
      %23 = arith.truncf %22 : vector<16x128xf32> to vector<16x128xbf16>
      %c0_16 = arith.constant 0 : index
      %c0_17 = arith.constant 0 : index
      %24 = vector.load %arg6[%c0_16, %c0_17] : memref<16x128xbf16, #tpu.memory_space<vmem>>, vector<16x128xbf16>
      tpu.vector_store %arg6[%c0_16, %c0_17], %23 {strides = array<i32>} : memref<16x128xbf16, #tpu.memory_space<vmem>>, vector<16x128xbf16>,
    } else {
    }
    return
  }
  func.func @transform_0(%arg0: i32, %arg1: i32) -> (i32, i32) {
    %c0_i32 = arith.constant 0 : i32
    return %arg0, %arg1 : i32, i32
  }
  func.func @transform_1(%arg0: i32, %arg1: i32) -> (i32, i32) {
    %c0_i32 = arith.constant 0 : i32
    %c0_i32_0 = arith.constant 0 : i32
    %c0_i32_1 = arith.constant 0 : i32
    return %c0_i32, %c0_i32_0 : i32, i32
  }
  func.func @transform_2(%arg0: i32, %arg1: i32) -> (i32, i32) {
    %c0_i32 = arith.constant 0 : i32
    %c0_i32_0 = arith.constant 0 : i32
    return %arg0, %c0_i32 : i32, i32
  }
  func.func @transform_3(%arg0: i32, %arg1: i32) -> (i32, i32) {
    %c0_i32 = arith.constant 0 : i32
    %c0_i32_0 = arith.constant 0 : i32
    return %arg0, %c0_i32 : i32, i32
  }
  func.func @transform_4(%arg0: i32, %arg1: i32) -> (i32, i32) {
    %c0_i32 = arith.constant 0 : i32
    %c0_i32_0 = arith.constant 0 : i32
    return %arg0, %c0_i32 : i32, i32
  }
}

module attributes {stable_mosaic.version = 11 : i64} {
  func.func @_agg_kernel(%arg0: i32, %arg1: i32, %arg2: memref<16x16xbf16, #tpu.memory_space<vmem>>, %arg3: memref<16x128xbf16, #tpu.memory_space<vmem>>, %arg4: memref<16x128xf32, #tpu.memory_space<vmem>>, %arg5: memref<16x1xf32, #tpu.memory_space<vmem>>, %arg6: memref<16x128xf32, #tpu.memory_space<vmem>>, %arg7: memref<16x128xf32, #tpu.memory_space<vmem>>) attributes {dimension_semantics = [#tpu.dimension_semantics<parallel>, #tpu.dimension_semantics<arbitrary>], iteration_bounds = array<i64: 1, 1>, scalar_prefetch = 0 : i64, scratch_operands = 1 : i64, tpu.core_type = #tpu.core_type<tc>, window_params = [{transform_indices = @transform_0, window_bounds = array<i64: 16, 16>}, {pipeline_mode = #tpu.pipeline_mode<synchronous>, transform_indices = @transform_1, window_bounds = array<i64: 16, 128>}, {transform_indices = @transform_2, window_bounds = array<i64: 16, 128>}, {transform_indices = @transform_3, window_bounds = array<i64: 16, 1>}, {transform_indices = @transform_4, window_bounds = array<i64: 16, 128>}]} {
    %c0_i32 = arith.constant 0 : i32
    %0 = arith.cmpi eq, %arg1, %c0_i32 : i32
    %1 = arith.extui %0 : i1 to i32
    %c0_i32_0 = arith.constant 0 : i32
    %2 = arith.cmpi ne, %1, %c0_i32_0 : i32
    scf.if %2 {
      %cst_9 = arith.constant 0.000000e+00 : f32
      %15 = vector.broadcast %cst_9 : f32 to vector<16x128xf32>
      %c0_10 = arith.constant 0 : index
      %c0_11 = arith.constant 0 : index
      %16 = vector.load %arg7[%c0_10, %c0_11] : memref<16x128xf32, #tpu.memory_space<vmem>>, vector<16x128xf32>
      tpu.vector_store %arg7[%c0_10, %c0_11], %15 {strides = array<i32>} : memref<16x128xf32, #tpu.memory_space<vmem>>, vector<16x128xf32>,
    } else {
    }
    %c16_i32 = arith.constant 16 : i32
    %3 = arith.muli %arg1, %c16_i32 : i32
    %4 = tpu.assume_multiple %3, 16 : i32
    %5 = arith.index_cast %4 : i32 to index
    %c0 = arith.constant 0 : index
    %6 = vector.load %arg3[%5, %c0] : memref<16x128xbf16, #tpu.memory_space<vmem>>, vector<16x128xbf16>
    %c0_1 = arith.constant 0 : index
    %c0_2 = arith.constant 0 : index
    %7 = vector.load %arg7[%c0_1, %c0_2] : memref<16x128xf32, #tpu.memory_space<vmem>>, vector<16x128xf32>
    %c0_3 = arith.constant 0 : index
    %c0_4 = arith.constant 0 : index
    %8 = vector.load %arg2[%c0_3, %c0_4] : memref<16x16xbf16, #tpu.memory_space<vmem>>, vector<16x16xbf16>
    %cst = arith.constant dense<0.000000e+00> : vector<16x128xf32>
    %9 = tpu.matmul %8, %6, %cst {dimension_numbers = #tpu.dot_dimension_numbers<[1], [0], [0], [1], [0, 0, 1, 1], [], []>} : vector<16x16xbf16>, vector<16x128xbf16>, vector<16x128xf32> -> vector<16x128xf32>
    %10 = arith.addf %7, %9 : vector<16x128xf32>
    %c0_5 = arith.constant 0 : index
    %c0_6 = arith.constant 0 : index
    %11 = vector.load %arg7[%c0_5, %c0_6] : memref<16x128xf32, #tpu.memory_space<vmem>>, vector<16x128xf32>
    tpu.vector_store %arg7[%c0_5, %c0_6], %10 {strides = array<i32>} : memref<16x128xf32, #tpu.memory_space<vmem>>, vector<16x128xf32>,
    %c0_i32_7 = arith.constant 0 : i32
    %12 = arith.cmpi eq, %arg1, %c0_i32_7 : i32
    %13 = arith.extui %12 : i1 to i32
    %c0_i32_8 = arith.constant 0 : i32
    %14 = arith.cmpi ne, %13, %c0_i32_8 : i32
    scf.if %14 {
      %c0_9 = arith.constant 0 : index
      %c0_10 = arith.constant 0 : index
      %15 = vector.load %arg7[%c0_9, %c0_10] : memref<16x128xf32, #tpu.memory_space<vmem>>, vector<16x128xf32>
      %c0_11 = arith.constant 0 : index
      %c0_12 = arith.constant 0 : index
      %16 = vector.load %arg5[%c0_11, %c0_12] : memref<16x1xf32, #tpu.memory_space<vmem>>, vector<16x1xf32>
      %17 = vector.broadcast %16 : vector<16x1xf32> to vector<16x128xf32>
      %18 = arith.mulf %15, %17 : vector<16x128xf32>
      %c0_13 = arith.constant 0 : index
      %c0_14 = arith.constant 0 : index
      %19 = vector.load %arg4[%c0_13, %c0_14] : memref<16x128xf32, #tpu.memory_space<vmem>>, vector<16x128xf32>
      %20 = arith.addf %18, %19 : vector<16x128xf32>
      %c0_15 = arith.constant 0 : index
      %c0_16 = arith.constant 0 : index
      %21 = vector.load %arg6[%c0_15, %c0_16] : memref<16x128xf32, #tpu.memory_space<vmem>>, vector<16x128xf32>
      tpu.vector_store %arg6[%c0_15, %c0_16], %20 {strides = array<i32>} : memref<16x128xf32, #tpu.memory_space<vmem>>, vector<16x128xf32>,
    } else {
    }
    return
  }
  func.func @transform_0(%arg0: i32, %arg1: i32) -> (i32, i32) {
    %c0_i32 = arith.constant 0 : i32
    return %arg0, %arg1 : i32, i32
  }
  func.func @transform_1(%arg0: i32, %arg1: i32) -> (i32, i32) {
    %c0_i32 = arith.constant 0 : i32
    %c0_i32_0 = arith.constant 0 : i32
    %c0_i32_1 = arith.constant 0 : i32
    return %c0_i32, %c0_i32_0 : i32, i32
  }
  func.func @transform_2(%arg0: i32, %arg1: i32) -> (i32, i32) {
    %c0_i32 = arith.constant 0 : i32
    %c0_i32_0 = arith.constant 0 : i32
    return %arg0, %c0_i32 : i32, i32
  }
  func.func @transform_3(%arg0: i32, %arg1: i32) -> (i32, i32) {
    %c0_i32 = arith.constant 0 : i32
    %c0_i32_0 = arith.constant 0 : i32
    return %arg0, %c0_i32 : i32, i32
  }
  func.func @transform_4(%arg0: i32, %arg1: i32) -> (i32, i32) {
    %c0_i32 = arith.constant 0 : i32
    %c0_i32_0 = arith.constant 0 : i32
    return %arg0, %c0_i32 : i32, i32
  }
}

</mosaic_0001>

<bundles_post_ra>
// kernel: sage_forward.2
= control target key start
LH: loop header
LB: loop body
LE: loop exit
PB: predicated region body
PF: predicated region fallthrough
CT: control target
= control target key end

     0   :  { %v162_v0 = vmov 0.0   ;;  %vm163_vm0 = vmmov 0   ;;  %v164_v3 = vmov 0   ;;  %vm46_vm1 = vcmask 130048   ;;  %s211_s1 = inlined_call_operand.vmem [shape: bf16[16,128], index: 1, kind: input, shape index: {}]   ;;  %s212_s0 = inlined_call_operand.vmem [shape: bf16[16,16], index: 0, kind: input, shape index: {}]   ;;  %s213_s3 = inlined_call_operand.vmem [shape: f32[16,1], index: 3, kind: input, shape index: {}]   ;;  %s214_s2 = inlined_call_operand.vmem [shape: f32[16,128], index: 2, kind: input, shape index: {}]   ;;  %s215_s4 = inlined_call_operand.vmem [shape: bf16[16,128], index: 4, kind: output, shape index: {}]  }
   0x1   :  { %150 = vmatprep.subr.bf16.mxu0 %v162_v0  ;;  %v160_v1 = vld [vmem:[%s211_s1] sm:$0xff]   ;;  %152 = vmatprep.mubr.msk.bf16.mxu0 %vm163_vm0, %v162_v0  ;;  %v101_v5 = vld [vmem:[%s213_s3 + $0x8] sm:$0xff] }
   0x2   :  { %v161_v2 = vld [vmem:[%s212_s0] sm:$0xff]   ;;  %159 = vset.pattern.permute.xlu0 %v164_v3  ;;  %151 = vmatpush3.bf16.msra.mxu0 %v160_v1  ;;  %v115_v13 = vld [vmem:[%s214_s2 + $0x8] sm:$0xff] }
   0x3   :  { %v100_v4 = vld [vmem:[%s213_s3] sm:$0xff] }
   0x4   :  { %104 = vperm.xlu0 %159, %v100_v4   ;;  %v114_v9 = vld [vmem:[%s214_s2] sm:$0xff] }
   0x5   :  { %153 = vmatmul.mubr.msk.bf16.vlgmr.msra.gmra.mxu0 %vm46_vm1, %v161_v2 }
   0x8   :  { %109 = vperm.xlu0 %159, %v101_v5  }
  0x7f   :  { %v105_v6 = vpop.permute.xlu0 %104 }
  0x83   :  { %v110_v11 = vpop.permute.xlu0 %109 }
  0xc5   :  { %v84_v7 = vpop.f32.mrf.mxu0 }
  0xc6   :  { %v112_v8 = vmul.f32 %v105_v6, %v84_v7 }
  0xc7   :  { %v154_v10 = vpop.f32.mrf.mxu0 }
  0xc8   :  { %v116_v14 = vadd.f32 %v114_v9, %v112_v8 }
  0xc9   :  { %v87_v12 = vpop.f32.mrf.mxu0 }
  0xca   :  { %v113_v15 = vmul.f32 %v110_v11, %v87_v12  ;;  %v118_v18 = vmax.f32 %v116_v14, 0.0 }
  0xcb   :  { %v155_v16 = vpop.f32.mrf.mxu0 }
  0xcc   :  { %v117_v17 = vadd.f32 %v115_v13, %v113_v15 }
  0xce   :  { %v119_v19 = vmax.f32 %v117_v17, 0.0 }
  0xd0   :  { %v146_v20 = vpack.c.bf16 %v119_v19, %v118_v18 }
  0xd2   :  { %147 = vst [vmem:[%s215_s4] sm:$0xff] %v146_v20  }

// kernel: sage_forward.3
= control target key start
LH: loop header
LB: loop body
LE: loop exit
PB: predicated region body
PF: predicated region fallthrough
CT: control target
= control target key end

     0   :  { %v181_v1 = vmov 0.0   ;;  %vm182_vm0 = vmmov 0   ;;  %vm47_vm1 = vcmask 130048   ;;  %s233_s0 = inlined_call_operand.vmem [shape: bf16[16,16], index: 0, kind: input, shape index: {}]   ;;  %s234_s1 = inlined_call_operand.vmem [shape: bf16[16,128], index: 1, kind: input, shape index: {}]   ;;  %s235_s2 = inlined_call_operand.vmem [shape: f32[16,128], index: 2, kind: input, shape index: {}]   ;;  %s236_s3 = inlined_call_operand.vmem [shape: f32[16,1], index: 3, kind: input, shape index: {}]   ;;  %s237_s4 = inlined_call_operand.hbm [shape: f32[16,128], index: 4, kind: output, shape index: {}]  }
   0x1   :  { %v157_v0 = vld [vmem:[%s234_s1] sm:$0xff]   ;;  %144 = vmatprep.subr.bf16.mxu0 %v181_v1  ;;  %146 = vmatprep.mubr.msk.bf16.mxu0 %vm182_vm0, %v181_v1 }
   0x2   :  { %v158_v2 = vld [vmem:[%s233_s0] sm:$0xff]   ;;  %145 = vmatpush3.bf16.msra.mxu0 %v157_v0 }
   0x3   :  { %v101_v3 = vld [vmem:[%s236_s3] sm:$0xff] }
   0x4   :  { %9 = vsyncpa [#allocation4], 0  ;;  %v183_v4 = vmov 0   ;;  %v102_v5 = vld [vmem:[%s236_s3 + $0x8] sm:$0xff]  ;;  %v115_v8 = vld [vmem:[%s235_s2] sm:$0xff]  ;;  %s184_s23 = smov [#allocation3]  }
   0x5   :  { %156 = vset.pattern.permute.xlu0 %v183_v4  ;;  %147 = vmatmul.mubr.msk.bf16.vlgmr.msra.gmra.mxu0 %vm47_vm1, %v158_v2  ;;  %s126_s24 = sshll.u32 %s184_s23, 4  ;;  %v116_v14 = vld [vmem:[%s235_s2 + $0x8] sm:$0xff]  ;;  %s127_s24 = int_to_ptr.vmem [resolvable:$true] %s126_s24 }
   0x6   :  { %105 = vperm.xlu0 %156, %v101_v3   ;;  %s159_s3 = scalar_lea.vmem %s127_s24, 256  ;;  %p164_p1 = scmp.lt.s32.totalorder %s127_s24, %s127_s24 }
   0x7   :  { %p160_p0 = scmp.ne.s32.totalorder %s127_s24, %s159_s3  ;;  %p165_p2 = scmp.lt.s32.totalorder %s159_s3, %s159_s3 }
   0x9   :  { %p166_p3 = por %p165_p2, %p164_p1 }
   0xa   :  { %110 = vperm.xlu0 %156, %v102_v5  }
   0xb   :  { %p167_p4 = pnand %p166_p3, %p160_p0 }
  0x81   :  { %v106_v6 = vpop.permute.xlu0 %105 }
  0x85   :  { %v111_v12 = vpop.permute.xlu0 %110 }
  0xc5   :  { %v85_v7 = vpop.f32.mrf.mxu0 }
  0xc6   :  { %v113_v9 = vmul.f32 %v106_v6, %v85_v7 }
  0xc7   :  { %v148_v10 = vpop.f32.mrf.mxu0 }
  0xc8   :  { %v117_v11 = vadd.f32 %v115_v8, %v113_v9 }
  0xc9   :  { %v88_v13 = vpop.f32.mrf.mxu0 }
  0xca   :  { %119 = vst [vmem:[#allocation3] sm:$0xff] %v117_v11  ;;  %v114_v15 = vmul.f32 %v111_v12, %v88_v13 }
  0xcb   :  { %v149_v16 = vpop.f32.mrf.mxu0 }
  0xcc   :  { %v118_v17 = vadd.f32 %v116_v14, %v114_v15 }
  0xce   :  { %120 = vst [vmem:[#allocation3 + $0x8] sm:$0xff] %v118_v17 }
  0xcf   :  { %170 = shalt.err (!%p167_p4)
}
  0xd0   :  { %s185_s27 = smov 128   ;;  %s186_s28 = smov 8  }
  0xd1   :  { %132 = dma.vmem_to_hbm [thread:$0]  %s127_s24, 256, %s237_s4, [#allocation4], %s185_s27, %s185_s27, %s186_s28  }
  0xd2   :  { %179 = dma.done.wait [#allocation4], 256  }
  0xd3   :  { %180 = vsyncadd [#allocation4], 4294967040 }
  0xd4   :  { %136 = vsyncpa [#allocation4], 1 }

</bundles_post_ra>
